<compile_context>
chip_gen: v5e
topology: v5e:2x2
jax: 0.10.0
libtpu: 0.0.40
codegen_flags: <defaults>
</compile_context>

<pallas_src>
import jax
import jax.numpy as jnp
from jax.experimental import pallas as pl
from jax.experimental.pallas import tpu as pltpu


def _pos_enc_kernel(x_ref, pe_ref, o_ref):
    # x_ref / o_ref: (TB, N*D) block of batch rows (flattened seq*feature, lane-dense)
    # pe_ref:        (1,  N*D) shared sinusoidal table, resident across grid steps
    o_ref[...] = x_ref[...] + pe_ref[...]


def make_positional_encoding_table(d_model, max_len=50, dtype=jnp.float32):
    """Matches the PyTorch buffer: pe[:,0::2]=sin(pos*div), pe[:,1::2]=cos(pos*div)."""
    position = jnp.arange(max_len, dtype=jnp.float32)[:, None]               # (max_len, 1)
    div_term = jnp.exp(
        jnp.arange(0, d_model, 2, dtype=jnp.float32) * (-jnp.log(10000.0) / d_model)
    )                                                                        # (ceil(d/2),)
    ang = position * div_term                                                # (max_len, ceil(d/2))
    # Interleave sin/cos -> even columns sin, odd columns cos; slice handles odd d_model.
    pe = jnp.stack([jnp.sin(ang), jnp.cos(ang)], axis=-1).reshape(max_len, -1)[:, :d_model]
    return pe.astype(dtype)


def positional_encoding_pallas(x, pe_table, *, target_block_bytes=2 * 1024 * 1024):
    """x: (B, N, d_model); pe_table: (max_len, d_model) with N <= max_len."""
    B, N, D = x.shape
    max_len = pe_table.shape[0]
    assert N <= max_len, f"sequence length {N} exceeds max_len {max_len}"
    assert pe_table.shape[1] == D, (pe_table.shape, D)

    ND = N * D
    pe = pe_table[:N, :].astype(x.dtype).reshape(1, ND)   # (1, N*D), lane-dense, contiguous
    x2 = x.reshape(B, ND)                                  # (B, N*D), contiguous -> free reshape

    # Pick how many batch rows per block: target ~2 MiB per block (safe on v5e's
    # 16 MiB scoped VMEM with double-buffered in+out, saturates HBM on v6e/v7x).
    row_bytes = ND * jnp.dtype(x.dtype).itemsize
    tb = max(1, min(B, target_block_bytes // max(row_bytes, 1)))
    if tb < B:
        # Keep the sublane dim a multiple of 8 when not taking the full batch.
        tb = max(8, (tb // 8) * 8)
        tb = min(tb, B)
    grid_b = pl.cdiv(B, tb)

    out2 = pl.pallas_call(
        _pos_enc_kernel,
        out_shape=jax.ShapeDtypeStruct((B, ND), x.dtype),
        grid_spec=pltpu.PrefetchScalarGridSpec(
            num_scalar_prefetch=0,
            grid=(grid_b,),
            in_specs=[
                pl.BlockSpec((tb, ND), lambda b: (b, 0)),   # batch-row slab
                pl.BlockSpec((1, ND), lambda b: (0, 0)),    # constant -> stays resident in VMEM
            ],
            out_specs=pl.BlockSpec((tb, ND), lambda b: (b, 0)),
        ),
        compiler_params=pltpu.CompilerParams(
            dimension_semantics=("parallel",),
        ),
    )(x2, pe)

    return out2.reshape(B, N, D)


def positional_encoding_reference(x, pe_table):
    return x + pe_table[None, : x.shape[1], :].astype(x.dtype)


if __name__ == "__main__":
    key = jax.random.PRNGKey(0)

    # Shapes consistent with the module (small test case).
    B, N, d_model, max_len = 2, 8, 32, 50
    x = jax.random.normal(key, (B, N, d_model), dtype=jnp.float32)
    pe_table = make_positional_encoding_table(d_model, max_len=max_len)

    out = positional_encoding_pallas(x, pe_table)
    out = jax.block_until_ready(out)

    ref = positional_encoding_reference(x, pe_table)
    assert out.shape == (B, N, d_model), out.shape
    assert jnp.allclose(out, ref, rtol=1e-6, atol=1e-6), float(jnp.max(jnp.abs(out - ref)))

    # Second small check: full max_len sequence (non-multiple-of-128 flattened lane width).
    key2 = jax.random.PRNGKey(1)
    x2 = jax.random.normal(key2, (4, max_len, d_model), dtype=jnp.float32)
    out2 = jax.block_until_ready(positional_encoding_pallas(x2, pe_table))
    ref2 = positional_encoding_reference(x2, pe_table)
    assert jnp.allclose(out2, ref2, rtol=1e-6, atol=1e-6), float(jnp.max(jnp.abs(out2 - ref2)))

    print("KERNEL_OK")
</pallas_src>

<mosaic_0001>
module attributes {stable_mosaic.version = 11 : i64} {
  func.func @_pos_enc_kernel(%arg0: i32, %arg1: memref<2x256xf32, #tpu.memory_space<vmem>>, %arg2: memref<1x256xf32, #tpu.memory_space<vmem>>, %arg3: memref<2x256xf32, #tpu.memory_space<vmem>>) attributes {dimension_semantics = [#tpu.dimension_semantics<parallel>], iteration_bounds = array<i64: 1>, scalar_prefetch = 0 : i64, scratch_operands = 0 : i64, tpu.core_type = #tpu.core_type<tc>, window_params = [{transform_indices = @transform_0, window_bounds = array<i64: 2, 256>}, {pipeline_mode = #tpu.pipeline_mode<synchronous>, transform_indices = @transform_1, window_bounds = array<i64: 1, 256>}, {transform_indices = @transform_2, window_bounds = array<i64: 2, 256>}]} {
    %c0 = arith.constant 0 : index
    %c0_0 = arith.constant 0 : index
    %0 = vector.load %arg1[%c0, %c0_0] : memref<2x256xf32, #tpu.memory_space<vmem>>, vector<2x256xf32>
    %c0_1 = arith.constant 0 : index
    %c0_2 = arith.constant 0 : index
    %1 = vector.load %arg2[%c0_1, %c0_2] : memref<1x256xf32, #tpu.memory_space<vmem>>, vector<1x256xf32>
    %2 = vector.broadcast %1 : vector<1x256xf32> to vector<2x256xf32>
    %3 = arith.addf %0, %2 : vector<2x256xf32>
    %c0_3 = arith.constant 0 : index
    %c0_4 = arith.constant 0 : index
    %4 = vector.load %arg3[%c0_3, %c0_4] : memref<2x256xf32, #tpu.memory_space<vmem>>, vector<2x256xf32>
    tpu.vector_store %arg3[%c0_3, %c0_4], %3 {strides = array<i32>} : memref<2x256xf32, #tpu.memory_space<vmem>>, vector<2x256xf32>,
    return
  }
  func.func @transform_0(%arg0: i32) -> (i32, i32) {
    %c0_i32 = arith.constant 0 : i32
    %c0_i32_0 = arith.constant 0 : i32
    return %arg0, %c0_i32 : i32, i32
  }
  func.func @transform_1(%arg0: i32) -> (i32, i32) {
    %c0_i32 = arith.constant 0 : i32
    %c0_i32_0 = arith.constant 0 : i32
    %c0_i32_1 = arith.constant 0 : i32
    return %c0_i32, %c0_i32_0 : i32, i32
  }
  func.func @transform_2(%arg0: i32) -> (i32, i32) {
    %c0_i32 = arith.constant 0 : i32
    %c0_i32_0 = arith.constant 0 : i32
    return %arg0, %c0_i32 : i32, i32
  }
}

</mosaic_0001>

<bundles_post_ra>
// kernel: tpu_custom_call.1
= control target key start
LH: loop header
LB: loop body
LE: loop exit
PB: predicated region body
PF: predicated region fallthrough
CT: control target
= control target key end

     0   :  { %7 = vsyncpa [#allocation3], 0  ;;  %s177_s0 = inlined_call_operand.hbm [shape: f32[2,256], index: 0, kind: input, shape index: {}]   ;;  %s178_s1 = inlined_call_operand.hbm [shape: f32[1,256], index: 1, kind: input, shape index: {}]   ;;  %s179_s2 = inlined_call_operand.hbm [shape: f32[2,256], index: 2, kind: output, shape index: {}]  }
   0x1   :  { %8 = vsyncpa [#allocation6], 0 }
   0x2   :  { %9 = vsyncpa [#allocation4], 0  ;;  %s15_s11 = sshll.u32 %s177_s0, 4  ;;  %s150_s12 = smov [#allocation2]   ;;  %s16_s11 = int_to_ptr.hbm [resolvable:$true] %s15_s11 }
   0x3   :  { %s17_s13 = sshll.u32 %s150_s12, 4  ;;  %s26_s16 = sshll.u32 %s178_s1, 4  ;;  %s18_s13 = int_to_ptr.vmem [resolvable:$true] %s17_s13  ;;  %s27_s16 = int_to_ptr.hbm [resolvable:$true] %s26_s16 }
   0x4   :  { %20 = dma.hbm_to_vmem [thread:$0]  %s16_s11, 64, %s18_s13, [#allocation3]  }
   0x5   :  { %s151_s17 = smov [#allocation5]  }
   0x6   :  { %s28_s18 = sshll.u32 %s151_s17, 4  ;;  %s29_s18 = int_to_ptr.vmem [resolvable:$true] %s28_s18 }
   0x7   :  { %31 = dma.hbm_to_vmem [thread:$0]  %s27_s16, 32, %s29_s18, [#allocation6]  }
   0x8   :  { %144 = dma.done.wait [#allocation3], 64  }
   0x9   :  { %145 = vsyncadd [#allocation3], 4294967232 }
   0xa   :  { %146 = dma.done.wait [#allocation6], 32  }
   0xb   :  { %147 = vsyncadd [#allocation6], 4294967264  ;;  %v41_v0 = vld [vmem:[#allocation5] sm:$0x3]  ;;  %vm46_vm0 = vcmask 1041408   ;;  %s152_s0 = smov [#allocation7]  }
   0xc   :  { %v43_v1 = vperm.slane %v41_v0, 0  ;;  %v44_v2 = vperm.slane %v41_v0, 1  ;;  %v40_v3 = vld [vmem:[#allocation2] sm:$0xf]  ;;  %s56_s19 = sshll.u32 %s152_s0, 4  ;;  %s58_s21 = sshll.u32 %s179_s2, 4  ;;  %s57_s19 = int_to_ptr.vmem [resolvable:$true] %s56_s19  ;;  %s59_s21 = int_to_ptr.hbm [resolvable:$true] %s58_s21 }
   0xe   :  { %v45_v4 = vrot.slane %v44_v2, 6 }
  0x10   :  { %v47_v5 = vsel %vm46_vm0, %v43_v1, %v45_v4 }
  0x11   :  { %v49_v6 = vadd.f32 %v47_v5, %v40_v3 }
  0x13   :  { %50 = vst [vmem:[#allocation7] sm:$0xf] %v49_v6 }
  0x14   :  { %61 = dma.vmem_to_hbm [thread:$0]  %s57_s19, 64, %s59_s21, [#allocation4]  }
  0x15   :  { %148 = dma.done.wait [#allocation4], 64  }
  0x16   :  { %149 = vsyncadd [#allocation4], 4294967232 }
  0x17   :  { %66 = vsyncpa [#allocation3], 1 }
  0x18   :  { %67 = vsyncpa [#allocation6], 1 }
  0x19   :  { %68 = vsyncpa [#allocation4], 1 }

</bundles_post_ra>
